<compile_context>
chip_gen: v7x
topology: tpu7x:2x2x1
jax: 0.10.0
libtpu: 0.0.40
codegen_flags: <defaults>
</compile_context>

<pallas_src>
import functools

import jax
import jax.numpy as jnp
from jax.experimental import pallas as pl
from jax.experimental.pallas import tpu as pltpu

_LANE = 128      # lane width  (last dim)
_SUBLANE = 8     # sublane width (second-to-last dim)


def _fused_heads_kernel(x_ref, wb_ref, o_ref, *, k):
    # x_ref : (Bt, K)        activation tile
    # wb_ref: (K+1, N_pad)   block-diagonal weights, bias folded in as row K
    # o_ref : (Bt, N_pad)    lane-dense output tile (all heads side by side)
    # One MXU pass for all heads; bias is the (1, N_pad) broadcast add of row K.
    o_ref[...] = (
        jnp.dot(x_ref[...], wb_ref[:k, :], preferred_element_type=jnp.float32)
        + wb_ref[k:k + 1, :]
    )


def pack_head_params(weights, biases, size, dtype=jnp.float32):
    """One-time packing of the per-head nn.Linear params (parameter-load time,
    NOT per forward).

    weights: list of (out_i, size) nn.Linear weight matrices (last = Emo head).
    biases : list of (out_i,) bias vectors.

    Returns (wb_packed, out_dims, col_offsets):
      wb_packed: (n_tasks*size + 1, N_pad) block-diagonal weight with the
                 concatenated biases folded into the last row; N_pad 128-aligned.
    """
    n_tasks = len(weights)
    out_dims = [int(w.shape[0]) for w in weights]
    n_total = sum(out_dims)
    n_pad = max(_LANE, pl.cdiv(n_total, _LANE) * _LANE)
    k = n_tasks * size

    wb = jnp.zeros((k + 1, n_pad), dtype=dtype)
    col = 0
    for i, (w, b) in enumerate(zip(weights, biases)):
        od = out_dims[i]
        wb = wb.at[i * size:(i + 1) * size, col:col + od].set(
            jnp.asarray(w, dtype).T)
        wb = wb.at[k, col:col + od].set(jnp.asarray(b, dtype))
        col += od
    col_offsets = [sum(out_dims[:i]) for i in range(n_tasks)]
    return wb, out_dims, col_offsets


def multi_task_predictor_forward(hn, word, packed_params, size,
                                 use_word=True, batch_block=1024):
    """Reproduces MultiTaskPredictor.forward with a single fused Pallas matmul.

    Returns a list of per-head outputs [(B, out_0), (B, out_1), ...].
    """
    wb_packed, out_dims, col_offsets = packed_params
    n_tasks = len(out_dims)
    k = n_tasks * size
    n_pad = wb_packed.shape[1]

    feat_width = hn.shape[1] + (word.shape[-1] if use_word else 0)
    assert k <= feat_width, (
        f"per-task slices need {k} features but h_res only has {feat_width}")

    # Avoid materializing the (B, 2*input_dim) concat when the per-task slices
    # never reach the word half (always true in the shipped config where
    # n_tasks*size == hn width). Matches the PyTorch forward exactly.
    if k <= hn.shape[1]:
        x = hn[:, :k]
    else:
        h_res = jnp.concatenate([hn, jnp.squeeze(word, axis=1)], axis=1)
        x = h_res[:, :k]
    x = x.astype(wb_packed.dtype)

    B = x.shape[0]
    # NOTE: keep f32 end-to-end (1e-5 tolerance). For production batch sizes,
    # bf16 x/wb_packed (dot keeps preferred_element_type=f32) halves the
    # dominant HBM streams at ~1e-2 tolerance.
    cost = pl.CostEstimate(
        flops=2 * B * k * n_pad,
        transcendentals=0,
        bytes_accessed=int(x.size * x.dtype.itemsize
                           + wb_packed.size * wb_packed.dtype.itemsize
                           + B * n_pad * 4),
    )
    kernel = functools.partial(_fused_heads_kernel, k=k)
    out_shape = jax.ShapeDtypeStruct((B, n_pad), jnp.float32)

    if B <= batch_block:
        # Gridless: full-array blocks (exempt from the (8,128) divisibility
        # rule; Mosaic sublane-pads the VMEM tiles internally).
        out = pl.pallas_call(kernel, out_shape=out_shape, cost_estimate=cost)(
            x, wb_packed)
    else:
        # Production batch sizes: tile the batch so the per-step slab stays well
        # under the scoped VMEM limit and the grid can shard across TensorCores.
        grid = (pl.cdiv(B, batch_block),)
        out = pl.pallas_call(
            kernel,
            out_shape=out_shape,
            grid=grid,
            in_specs=[
                pl.BlockSpec((batch_block, k), lambda i: (i, 0)),
                pl.BlockSpec((k + 1, n_pad), lambda i: (0, 0)),
            ],
            out_specs=pl.BlockSpec((batch_block, n_pad), lambda i: (i, 0)),
            compiler_params=pltpu.CompilerParams(
                dimension_semantics=("parallel",)),
            cost_estimate=cost,
        )(x, wb_packed)

    # Per-head column slices are cheap layout plumbing on the single lane-dense
    # slab (kept here to preserve the module's list-of-heads return signature).
    return [
        out[:, col_offsets[i]:col_offsets[i] + out_dims[i]]
        for i in range(n_tasks)
    ]


def _reference_forward(hn, word, weights, biases, size, use_word=True):
    if use_word:
        h_res = jnp.concatenate([hn, jnp.squeeze(word, axis=1)], axis=1)
    else:
        h_res = hn
    outs = []
    for i, (w, b) in enumerate(zip(weights, biases)):
        x = h_res[:, i * size:(i + 1) * size]
        outs.append(x @ w.T + b)
    return outs


if __name__ == "__main__":
    key = jax.random.PRNGKey(0)

    # Module config: dims = ['A', 'B', 'Emo'], use_emo=True, use_word=True
    dims = ["A", "B", "Emo"]
    size = 32                     # = input_dim / len(dims)
    input_dim = size * len(dims)  # 96
    batch = 2
    n_plain = len(set(dims) - {"Emo"})   # 2 heads of (size -> 3)
    head_out_dims = [3] * n_plain + [8]  # + Emo head (size -> 8)

    keys = jax.random.split(key, 2 + 2 * len(head_out_dims))
    hn = jax.random.normal(keys[0], (batch, input_dim), dtype=jnp.float32)
    word = jax.random.normal(keys[1], (batch, 1, input_dim), dtype=jnp.float32)

    # Deterministic synthetic parameters (nn.Linear shapes: W (out, in), b (out,))
    weights, biases = [], []
    for i, od in enumerate(head_out_dims):
        weights.append(
            0.1 * jax.random.normal(keys[2 + 2 * i], (od, size), dtype=jnp.float32))
        biases.append(
            0.1 * jax.random.normal(keys[3 + 2 * i], (od,), dtype=jnp.float32))

    # Packing is done ONCE (parameter-load time), outside the forward path.
    packed = pack_head_params(weights, biases, size)

    # --- shipped config (tiny batch, gridless path) ---
    outs = multi_task_predictor_forward(hn, word, packed, size, use_word=True)
    outs = [jax.block_until_ready(o) for o in outs]
    refs = _reference_forward(hn, word, weights, biases, size, use_word=True)
    for o, r in zip(outs, refs):
        assert o.shape == r.shape
        assert jnp.allclose(o, r, atol=1e-5, rtol=1e-5)

    # --- batch-gridded path (production-batch shape, ragged last tile) ---
    big_b = 20
    kb = jax.random.split(jax.random.PRNGKey(1), 2)
    hn_b = jax.random.normal(kb[0], (big_b, input_dim), dtype=jnp.float32)
    word_b = jax.random.normal(kb[1], (big_b, 1, input_dim), dtype=jnp.float32)
    outs_b = multi_task_predictor_forward(
        hn_b, word_b, packed, size, use_word=True, batch_block=8)
    outs_b = [jax.block_until_ready(o) for o in outs_b]
    refs_b = _reference_forward(hn_b, word_b, weights, biases, size, use_word=True)
    for o, r in zip(outs_b, refs_b):
        assert o.shape == r.shape
        assert jnp.allclose(o, r, atol=1e-5, rtol=1e-5)

    print("KERNEL_OK")
</pallas_src>

<mosaic_0001>
module attributes {stable_mosaic.version = 11 : i64} {
  func.func @_fused_heads_kernel(%arg0: memref<2x96xf32, #tpu.memory_space<vmem>>, %arg1: memref<97x128xf32, #tpu.memory_space<vmem>>, %arg2: memref<2x128xf32, #tpu.memory_space<vmem>>) attributes {dimension_semantics = [], scalar_prefetch = 0 : i64, scratch_operands = 0 : i64, tpu.core_type = #tpu.core_type<tc>} {
    %c0 = arith.constant 0 : index
    %c0_0 = arith.constant 0 : index
    %0 = vector.load %arg0[%c0, %c0_0] : memref<2x96xf32, #tpu.memory_space<vmem>>, vector<2x96xf32>
    %c0_1 = arith.constant 0 : index
    %c0_2 = arith.constant 0 : index
    %1 = vector.load %arg1[%c0_1, %c0_2] : memref<97x128xf32, #tpu.memory_space<vmem>>, vector<96x128xf32>
    %cst = arith.constant dense<0.000000e+00> : vector<2x128xf32>
    %2 = tpu.matmul %0, %1, %cst {dimension_numbers = #tpu.dot_dimension_numbers<[1], [0], [0], [1], [0, 0, 1, 1], [], []>} : vector<2x96xf32>, vector<96x128xf32>, vector<2x128xf32> -> vector<2x128xf32>
    %c96 = arith.constant 96 : index
    %c0_3 = arith.constant 0 : index
    %3 = vector.load %arg1[%c96, %c0_3] : memref<97x128xf32, #tpu.memory_space<vmem>>, vector<1x128xf32>
    %4 = vector.broadcast %3 : vector<1x128xf32> to vector<2x128xf32>
    %5 = arith.addf %2, %4 : vector<2x128xf32>
    %c0_4 = arith.constant 0 : index
    %c0_5 = arith.constant 0 : index
    %6 = vector.load %arg2[%c0_4, %c0_5] : memref<2x128xf32, #tpu.memory_space<vmem>>, vector<2x128xf32>
    tpu.vector_store %arg2[%c0_4, %c0_5], %5 {strides = array<i32>} : memref<2x128xf32, #tpu.memory_space<vmem>>, vector<2x128xf32>,
    return
  }
}

</mosaic_0001>

<bundles_post_ra>
// kernel: tpu_custom_call.1
= control target key start
LH: loop header
LB: loop body
LE: loop exit
PB: predicated region body
PF: predicated region fallthrough
CT: control target
= control target key end

     0   :  { %7 = vsyncpa [#allocation3], 0  ;;  %s353_s0 = inlined_call_operand.hbm [shape: f32[2,96], index: 0, kind: input, shape index: {}]   ;;  %s354_s1 = inlined_call_operand.hbm [shape: f32[97,128], index: 1, kind: input, shape index: {}]   ;;  %s355_s2 = inlined_call_operand.hbm [shape: f32[2,128], index: 2, kind: output, shape index: {}]  }
   0x1   :  { %8 = vsyncpa [#allocation6], 0 }
   0x2   :  { %9 = vsyncpa [#allocation4], 0  ;;  %s287_s9 = smov [#allocation2]   ;;  %s288_s11 = smov [#allocation5]  }
   0x3   :  { %s16_s10 = sshll.u32 %s287_s9, 4  ;;  %s25_s12 = sshll.u32 %s288_s11, 4  ;;  %s17_s10 = int_to_ptr.vmem [resolvable:$true] %s16_s10  ;;  %s310_s12 = int_to_ptr.vmem [resolvable:$true] %s25_s12 }
   0x4   :  { %s215_s15 = scalar_lea.hbm %s353_s0, 32 }
   0x5   :  { %p216_p0 = scmp.ne.s32.totalorder %s353_s0, %s215_s15  ;;  %p219_p1 = scmp.lt.u32.totalorder %s215_s15, %s353_s0 }
   0x7   :  { %p221_p2 = pnand %p219_p1, %p216_p0 }
   0x9   :  { %224 = shalt.err (!%p221_p2)
}
   0xa   :  { %s225_s20 = scalar_lea.vmem %s17_s10, 32  ;;  %p230_p4 = scmp.lt.s32.totalorder %s17_s10, %s17_s10 }
   0xb   :  { %p226_p3 = scmp.ne.s32.totalorder %s17_s10, %s225_s20  ;;  %p231_p5 = scmp.lt.s32.totalorder %s225_s20, %s225_s20 }
   0xd   :  { %p232_p6 = por %p231_p5, %p230_p4 }
   0xf   :  { %p233_p7 = pnand %p232_p6, %p226_p3 }
  0x11   :  { %236 = shalt.err (!%p233_p7)
}
  0x12   :  { %19 = dma.hbm_to_vmem [thread:$0]  %s353_s0, 32, %s17_s10, [#allocation3]  }
  0x13   :  { %s237_s25 = scalar_lea.hbm %s354_s1, 1664 }
  0x14   :  { %p238_p8 = scmp.ne.s32.totalorder %s354_s1, %s237_s25  ;;  %p241_p9 = scmp.lt.u32.totalorder %s237_s25, %s354_s1 }
  0x16   :  { %p243_p10 = pnand %p241_p9, %p238_p8 }
  0x18   :  { %246 = shalt.err (!%p243_p10)
}
  0x19   :  { %s247_s30 = scalar_lea.vmem %s310_s12, 1664  ;;  %p252_p12 = scmp.lt.s32.totalorder %s310_s12, %s310_s12 }
  0x1a   :  { %p248_p11 = scmp.ne.s32.totalorder %s310_s12, %s247_s30  ;;  %p253_p13 = scmp.lt.s32.totalorder %s247_s30, %s247_s30 }
  0x1c   :  { %p254_p0 = por %p253_p13, %p252_p12 }
  0x1e   :  { %p255_p1 = pnand %p254_p0, %p248_p11 }
  0x20   :  { %258 = shalt.err (!%p255_p1)
}
  0x21   :  { %s289_s0 = smov 128   ;;  %s290_s3 = smov 8  }
  0x22   :  { %31 = dma.hbm_to_vmem [thread:$0]  %s354_s1, 1664, %s310_s12, [#allocation6], %s289_s0, %s289_s0, %s290_s3  }
  0x23   :  { %281 = dma.done.wait [#allocation3], 32  }
  0x24   :  { %282 = vsyncadd [#allocation3], 4294967264 }
  0x25   :  { %283 = dma.done.wait [#allocation6], 1664  }
  0x26   :  { %284 = vsyncadd [#allocation6], 4294965632  ;;  %v291_v0 = vmov 0.0|0.0   ;;  %vm292_vm0 = vmmov 0   ;;  %v293_v1 = vmov 0.0   ;;  %v39_v2 = vld [vmem:[#allocation5] sm:$0xff] }
  0x27   :  { %189 = vmatprep.subr.bf16.mxu0 %v291_v0  ;;  %186 = vmatprep.mubr.msk.f32.mxu0 %vm292_vm0, %v293_v1  ;;  %v40_v3 = vld [vmem:[#allocation5 + $0x8] sm:$0xff]  ;;  %v41_v4 = vld [vmem:[#allocation5 + $0x10] sm:$0xff]  ;;  %v42_v6 = vld [vmem:[#allocation5 + $0x18] sm:$0xff]  ;;  %vm56_vm1 = vcmask 785408   ;;  %s294_s1 = smov [#allocation7]  }
  0x28   :  { %v190_v5 = vpack.c.bf16 %v40_v3, %v39_v2  ;;  %v193_v7 = vpack.c.bf16 %v42_v6, %v41_v4  ;;  %v43_v8 = vld [vmem:[#allocation5 + $0x20] sm:$0xff]  ;;  %v44_v9 = vld [vmem:[#allocation5 + $0x28] sm:$0xff]  ;;  %v45_v11 = vld [vmem:[#allocation5 + $0x30] sm:$0xff]  ;;  %s137_s6 = sshll.u32 %s294_s1, 4  ;;  %s138_s6 = int_to_ptr.vmem [resolvable:$true] %s137_s6 }
  0x29   :  { %v196_v10 = vpack.c.bf16 %v44_v9, %v43_v8  ;;  %v46_v12 = vld [vmem:[#allocation5 + $0x38] sm:$0xff]  ;;  %v47_v14 = vld [vmem:[#allocation5 + $0x40] sm:$0xff]  ;;  %v48_v15 = vld [vmem:[#allocation5 + $0x48] sm:$0xff]  ;;  %s259_s7 = scalar_lea.vmem %s138_s6, 32  ;;  %p264_p3 = scmp.lt.s32.totalorder %s138_s6, %s138_s6 }
  0x2a   :  { %191 = vmatpush3.bf16.msra.mxu0 %v190_v5  ;;  %v199_v13 = vpack.c.bf16 %v46_v12, %v45_v11  ;;  %v202_v16 = vpack.c.bf16 %v48_v15, %v47_v14  ;;  %v49_v17 = vld [vmem:[#allocation5 + $0x50] sm:$0xff]  ;;  %v50_v18 = vld [vmem:[#allocation5 + $0x58] sm:$0xff]  ;;  %v147_v21 = vld [vmem:[#allocation5 + $0x60] ss:$0 sm:$0xff]  ;;  %p260_p2 = scmp.ne.s32.totalorder %s138_s6, %s259_s7  ;;  %p265_p4 = scmp.lt.s32.totalorder %s259_s7, %s259_s7 }
  0x2b   :  { %192 = vmatprep.subr.bf16.mxu0 %v291_v0  ;;  %v205_v19 = vpack.c.bf16 %v50_v18, %v49_v17  ;;  %v38_v20 = vld [vmem:[#allocation2] sm:$0x3] }
  0x2c   :  { %p266_p5 = por %p265_p4, %p264_p3 }
  0x2e   :  { %194 = vmatpush3.bf16.msra.mxu0 %v193_v7  ;;  %p267_p6 = pnand %p266_p5, %p260_p2 }
  0x2f   :  { %195 = vmatprep.subr.bf16.mxu0 %v291_v0 }
  0x32   :  { %197 = vmatpush3.bf16.msra.mxu0 %v196_v10 }
  0x33   :  { %198 = vmatprep.subr.bf16.mxu0 %v291_v0 }
  0x36   :  { %200 = vmatpush3.bf16.msra.mxu0 %v199_v13 }
  0x37   :  { %201 = vmatprep.subr.bf16.mxu0 %v291_v0 }
  0x3a   :  { %203 = vmatpush3.bf16.msra.mxu0 %v202_v16 }
  0x3b   :  { %204 = vmatprep.subr.bf16.mxu0 %v291_v0 }
  0x3e   :  { %206 = vmatpush3.bf16.msra.mxu0 %v205_v19 }
  0x41   :  { %187 = vmatmul.mubr.msk.f32.vlgmr.msra.gmra.mrb[0].mxu0 %vm56_vm1, %v38_v20 }
 0x114   :  { %v126_v22 = vpop.f32.mrb[0].mxu0 }
 0x115   :  { %v127_v23 = vadd.f32 %v147_v21, %v126_v22  ;;  %v188_v24 = vpop.f32.mrb[1].mxu0 }
 0x117   :  { %130 = vst [vmem:[#allocation7] sm:$0x3] %v127_v23 }
 0x118   :  { %270 = shalt.err (!%p267_p6)
}
 0x119   :  { %s271_s10 = scalar_lea.hbm %s355_s2, 32 }
 0x11a   :  { %p272_p7 = scmp.ne.s32.totalorder %s355_s2, %s271_s10  ;;  %p275_p8 = scmp.lt.u32.totalorder %s271_s10, %s355_s2 }
 0x11c   :  { %p277_p9 = pnand %p275_p8, %p272_p7 }
 0x11e   :  { %280 = shalt.err (!%p277_p9)
}
 0x11f   :  { %140 = dma.vmem_to_hbm [thread:$0]  %s138_s6, 32, %s355_s2, [#allocation4]  }
 0x120   :  { %285 = dma.done.wait [#allocation4], 32  }
 0x121   :  { %286 = vsyncadd [#allocation4], 4294967264 }
 0x122   :  { %144 = vsyncpa [#allocation3], 1 }
 0x123   :  { %145 = vsyncpa [#allocation6], 1 }
 0x124   :  { %146 = vsyncpa [#allocation4], 1 }

</bundles_post_ra>
